<compile_context>
chip_gen: v7x
topology: tpu7x:2x2x1
jax: 0.10.0
libtpu: 0.0.40
codegen_flags: <defaults>
</compile_context>

<pallas_src>
import functools

import numpy as np
import jax
import jax.numpy as jnp
from jax.experimental import pallas as pl
from jax.experimental.pallas import tpu as pltpu

# Small, decoder-consistent shapes
BATCH = 2
IN_CHANNEL = 32          # in_channel
HIDDEN = 32              # fc_channels=[32]
POINT_DIM = 3
POINT_NUM = 16
OUT_DIM = POINT_DIM * POINT_NUM   # 48

LRELU_SLOPE = 0.01       # PyTorch nn.LeakyReLU default negative_slope


def _lrelu(x):
    return jnp.where(x > 0, x, LRELU_SLOPE * x)


def _round_up(n, m):
    return ((n + m - 1) // m) * m


def decoder_kernel(x_ref, w1_ref, b1_ref, w2_ref, b2_ref, w3_ref, b3_ref, o_ref):
    """Fused 3-layer MLP: (Linear+lrelu) -> (Linear+lrelu) -> Linear.
    Weights are block-resident; x/out are batch-tiled. All f32, MXU accumulates f32."""
    x = x_ref[...]
    # Layer 1: DenseBlock(in_channel -> hidden), lrelu. Dropout/BN: identity at eval.
    h = jnp.dot(x, w1_ref[...], preferred_element_type=jnp.float32) + b1_ref[...]
    h = _lrelu(h)
    # Layer 2: DenseBlock(hidden -> point_dim*point_num), lrelu.
    h = jnp.dot(h, w2_ref[...], preferred_element_type=jnp.float32) + b2_ref[...]
    h = _lrelu(h)
    # Layer 3: DenseBlock(out -> out), no activation. Output columns pre-permuted so
    # the module's reshape(-1, D, N).transpose(1, 2) is already folded in.
    y = jnp.dot(h, w3_ref[...], preferred_element_type=jnp.float32) + b3_ref[...]
    o_ref[...] = y.astype(o_ref.dtype)


def prepare_decoder_params(params):
    """One-time preprocessing (call once, reuse across forward calls).

    Folds the trailing reshape(-1, point_dim, point_num).transpose(1, 2) into a
    column permutation of w3/b3: output column n*POINT_DIM + d carries original
    column d*POINT_NUM + n. No padding is applied (natural shapes are already
    BlockSpec-legal: last dims equal full array dims, sublane dims multiples of 8).
    """
    w1, b1, w2, b2, w3, b3 = params
    perm = np.asarray(
        [d * POINT_NUM + n for n in range(POINT_NUM) for d in range(POINT_DIM)],
        dtype=np.int32)
    w3p = jnp.asarray(w3)[:, perm]
    b3p = jnp.asarray(b3)[:, perm]
    return (w1, b1, w2, b2, w3p, b3p)


@functools.partial(jax.jit, static_argnames=("tb",))
def pointnet_decoder_forward(x, prepared_params, tb=512):
    """x: (B, in_channel) float32, prepared_params from prepare_decoder_params().
    Returns (B, point_num, point_dim)."""
    w1, b1, w2, b2, w3p, b3p = prepared_params
    B, cin = x.shape

    # Batch tile: multiple of 8 (f32 sublane). Big tiles amortize per-grid-step
    # overhead; cap so moderate B still produces >=2 grid steps (both v7x TCs busy).
    two_step_tb = max(8, _round_up(pl.cdiv(B, 2), 8))
    tb = max(8, min(tb, two_step_tb))
    grid = (pl.cdiv(B, tb),)

    tiled_in = pl.BlockSpec((tb, cin), lambda i: (i, 0))
    tiled_out = pl.BlockSpec((tb, OUT_DIM), lambda i: (i, 0))
    resident = lambda a: pl.BlockSpec(a.shape, lambda i: (0, 0))  # weights/biases

    out_flat = pl.pallas_call(
        decoder_kernel,
        out_shape=jax.ShapeDtypeStruct((B, OUT_DIM), jnp.float32),
        grid=grid,
        in_specs=[
            tiled_in,
            resident(w1), resident(b1),
            resident(w2), resident(b2),
            resident(w3p), resident(b3p),
        ],
        out_specs=tiled_out,
        compiler_params=pltpu.CompilerParams(
            dimension_semantics=("parallel",)),
    )(x, w1, b1, w2, b2, w3p, b3p)

    # Transpose already folded into the weight permutation; only a cheap reshape left.
    return out_flat.reshape(B, POINT_NUM, POINT_DIM)


def make_params(key):
    k = jax.random.split(key, 6)
    scale = 0.1
    w1 = scale * jax.random.normal(k[0], (IN_CHANNEL, HIDDEN), jnp.float32)
    b1 = scale * jax.random.normal(k[1], (1, HIDDEN), jnp.float32)
    w2 = scale * jax.random.normal(k[2], (HIDDEN, OUT_DIM), jnp.float32)
    b2 = scale * jax.random.normal(k[3], (1, OUT_DIM), jnp.float32)
    w3 = scale * jax.random.normal(k[4], (OUT_DIM, OUT_DIM), jnp.float32)
    b3 = scale * jax.random.normal(k[5], (1, OUT_DIM), jnp.float32)
    return (w1, b1, w2, b2, w3, b3)


def reference_forward(x, params):
    """Pure-JAX reference mirroring the PyTorch module (eval mode)."""
    w1, b1, w2, b2, w3, b3 = params
    h = _lrelu(x @ w1 + b1)
    h = _lrelu(h @ w2 + b2)
    y = h @ w3 + b3
    return jnp.transpose(y.reshape(-1, POINT_DIM, POINT_NUM), (0, 2, 1))


if __name__ == "__main__":
    key = jax.random.PRNGKey(0)
    kx, kp = jax.random.split(key)
    x = jax.random.normal(kx, (BATCH, IN_CHANNEL), jnp.float32)
    params = make_params(kp)

    # One-time parameter prep (perm fold); cached/reused across calls.
    prepared = prepare_decoder_params(params)
    prepared = jax.block_until_ready(prepared)

    out = pointnet_decoder_forward(x, prepared)
    out = jax.block_until_ready(out)

    ref = reference_forward(x, params)
    assert out.shape == (BATCH, POINT_NUM, POINT_DIM), out.shape
    assert jnp.allclose(out, ref, atol=1e-4, rtol=1e-4), "mismatch vs reference"

    # TODO(synk): Dropout and trained BatchNorm1d stats inside DenseBlock are not
    # modeled (identity at eval with default init); fold trained BN affine into W/b
    # before calling prepare_decoder_params if needed.
    print("KERNEL_OK")
</pallas_src>

<mosaic_0001>
module attributes {stable_mosaic.version = 11 : i64} {
  func.func @decoder_kernel(%arg0: i32, %arg1: memref<8x32xf32, #tpu.memory_space<vmem>>, %arg2: memref<32x32xf32, #tpu.memory_space<vmem>>, %arg3: memref<1x32xf32, #tpu.memory_space<vmem>>, %arg4: memref<32x48xf32, #tpu.memory_space<vmem>>, %arg5: memref<1x48xf32, #tpu.memory_space<vmem>>, %arg6: memref<48x48xf32, #tpu.memory_space<vmem>>, %arg7: memref<1x48xf32, #tpu.memory_space<vmem>>, %arg8: memref<8x48xf32, #tpu.memory_space<vmem>>) attributes {dimension_semantics = [#tpu.dimension_semantics<parallel>], iteration_bounds = array<i64: 1>, scalar_prefetch = 0 : i64, scratch_operands = 0 : i64, tpu.core_type = #tpu.core_type<tc>, window_params = [{transform_indices = @transform_0, window_bounds = array<i64: 8, 32>}, {pipeline_mode = #tpu.pipeline_mode<synchronous>, transform_indices = @transform_1, window_bounds = array<i64: 32, 32>}, {pipeline_mode = #tpu.pipeline_mode<synchronous>, transform_indices = @transform_2, window_bounds = array<i64: 1, 32>}, {pipeline_mode = #tpu.pipeline_mode<synchronous>, transform_indices = @transform_3, window_bounds = array<i64: 32, 48>}, {pipeline_mode = #tpu.pipeline_mode<synchronous>, transform_indices = @transform_4, window_bounds = array<i64: 1, 48>}, {pipeline_mode = #tpu.pipeline_mode<synchronous>, transform_indices = @transform_5, window_bounds = array<i64: 48, 48>}, {pipeline_mode = #tpu.pipeline_mode<synchronous>, transform_indices = @transform_6, window_bounds = array<i64: 1, 48>}, {transform_indices = @transform_7, window_bounds = array<i64: 8, 48>}]} {
    %c0 = arith.constant 0 : index
    %c0_0 = arith.constant 0 : index
    %0 = vector.load %arg1[%c0, %c0_0] : memref<8x32xf32, #tpu.memory_space<vmem>>, vector<8x32xf32>
    %c0_1 = arith.constant 0 : index
    %c0_2 = arith.constant 0 : index
    %1 = vector.load %arg2[%c0_1, %c0_2] : memref<32x32xf32, #tpu.memory_space<vmem>>, vector<32x32xf32>
    %cst = arith.constant dense<0.000000e+00> : vector<8x32xf32>
    %2 = tpu.matmul %0, %1, %cst {dimension_numbers = #tpu.dot_dimension_numbers<[1], [0], [0], [1], [0, 0, 1, 1], [], []>} : vector<8x32xf32>, vector<32x32xf32>, vector<8x32xf32> -> vector<8x32xf32>
    %c0_3 = arith.constant 0 : index
    %c0_4 = arith.constant 0 : index
    %3 = vector.load %arg3[%c0_3, %c0_4] : memref<1x32xf32, #tpu.memory_space<vmem>>, vector<1x32xf32>
    %4 = vector.broadcast %3 : vector<1x32xf32> to vector<8x32xf32>
    %5 = arith.addf %2, %4 : vector<8x32xf32>
    %cst_5 = arith.constant 0.000000e+00 : f32
    %6 = vector.broadcast %cst_5 : f32 to vector<8x32xf32>
    %7 = arith.cmpf ogt, %5, %6 : vector<8x32xf32>
    %cst_6 = arith.constant 0.00999999977 : f32
    %8 = vector.broadcast %cst_6 : f32 to vector<8x32xf32>
    %9 = arith.mulf %8, %5 : vector<8x32xf32>
    %10 = arith.select %7, %5, %9 : vector<8x32xi1>, vector<8x32xf32>
    %c0_7 = arith.constant 0 : index
    %c0_8 = arith.constant 0 : index
    %11 = vector.load %arg4[%c0_7, %c0_8] : memref<32x48xf32, #tpu.memory_space<vmem>>, vector<32x48xf32>
    %cst_9 = arith.constant dense<0.000000e+00> : vector<8x48xf32>
    %12 = tpu.matmul %10, %11, %cst_9 {dimension_numbers = #tpu.dot_dimension_numbers<[1], [0], [0], [1], [0, 0, 1, 1], [], []>} : vector<8x32xf32>, vector<32x48xf32>, vector<8x48xf32> -> vector<8x48xf32>
    %c0_10 = arith.constant 0 : index
    %c0_11 = arith.constant 0 : index
    %13 = vector.load %arg5[%c0_10, %c0_11] : memref<1x48xf32, #tpu.memory_space<vmem>>, vector<1x48xf32>
    %14 = vector.broadcast %13 : vector<1x48xf32> to vector<8x48xf32>
    %15 = arith.addf %12, %14 : vector<8x48xf32>
    %cst_12 = arith.constant 0.000000e+00 : f32
    %16 = vector.broadcast %cst_12 : f32 to vector<8x48xf32>
    %17 = arith.cmpf ogt, %15, %16 : vector<8x48xf32>
    %cst_13 = arith.constant 0.00999999977 : f32
    %18 = vector.broadcast %cst_13 : f32 to vector<8x48xf32>
    %19 = arith.mulf %18, %15 : vector<8x48xf32>
    %20 = arith.select %17, %15, %19 : vector<8x48xi1>, vector<8x48xf32>
    %c0_14 = arith.constant 0 : index
    %c0_15 = arith.constant 0 : index
    %21 = vector.load %arg6[%c0_14, %c0_15] : memref<48x48xf32, #tpu.memory_space<vmem>>, vector<48x48xf32>
    %cst_16 = arith.constant dense<0.000000e+00> : vector<8x48xf32>
    %22 = tpu.matmul %20, %21, %cst_16 {dimension_numbers = #tpu.dot_dimension_numbers<[1], [0], [0], [1], [0, 0, 1, 1], [], []>} : vector<8x48xf32>, vector<48x48xf32>, vector<8x48xf32> -> vector<8x48xf32>
    %c0_17 = arith.constant 0 : index
    %c0_18 = arith.constant 0 : index
    %23 = vector.load %arg7[%c0_17, %c0_18] : memref<1x48xf32, #tpu.memory_space<vmem>>, vector<1x48xf32>
    %24 = vector.broadcast %23 : vector<1x48xf32> to vector<8x48xf32>
    %25 = arith.addf %22, %24 : vector<8x48xf32>
    %c0_19 = arith.constant 0 : index
    %c0_20 = arith.constant 0 : index
    %26 = vector.load %arg8[%c0_19, %c0_20] : memref<8x48xf32, #tpu.memory_space<vmem>>, vector<8x48xf32>
    tpu.vector_store %arg8[%c0_19, %c0_20], %25 {strides = array<i32>} : memref<8x48xf32, #tpu.memory_space<vmem>>, vector<8x48xf32>,
    return
  }
  func.func @transform_0(%arg0: i32) -> (i32, i32) {
    %c0_i32 = arith.constant 0 : i32
    %c0_i32_0 = arith.constant 0 : i32
    return %arg0, %c0_i32 : i32, i32
  }
  func.func @transform_1(%arg0: i32) -> (i32, i32) {
    %c0_i32 = arith.constant 0 : i32
    %c0_i32_0 = arith.constant 0 : i32
    %c0_i32_1 = arith.constant 0 : i32
    return %c0_i32, %c0_i32_0 : i32, i32
  }
  func.func @transform_2(%arg0: i32) -> (i32, i32) {
    %c0_i32 = arith.constant 0 : i32
    %c0_i32_0 = arith.constant 0 : i32
    %c0_i32_1 = arith.constant 0 : i32
    return %c0_i32, %c0_i32_0 : i32, i32
  }
  func.func @transform_3(%arg0: i32) -> (i32, i32) {
    %c0_i32 = arith.constant 0 : i32
    %c0_i32_0 = arith.constant 0 : i32
    %c0_i32_1 = arith.constant 0 : i32
    return %c0_i32, %c0_i32_0 : i32, i32
  }
  func.func @transform_4(%arg0: i32) -> (i32, i32) {
    %c0_i32 = arith.constant 0 : i32
    %c0_i32_0 = arith.constant 0 : i32
    %c0_i32_1 = arith.constant 0 : i32
    return %c0_i32, %c0_i32_0 : i32, i32
  }
  func.func @transform_5(%arg0: i32) -> (i32, i32) {
    %c0_i32 = arith.constant 0 : i32
    %c0_i32_0 = arith.constant 0 : i32
    %c0_i32_1 = arith.constant 0 : i32
    return %c0_i32, %c0_i32_0 : i32, i32
  }
  func.func @transform_6(%arg0: i32) -> (i32, i32) {
    %c0_i32 = arith.constant 0 : i32
    %c0_i32_0 = arith.constant 0 : i32
    %c0_i32_1 = arith.constant 0 : i32
    return %c0_i32, %c0_i32_0 : i32, i32
  }
  func.func @transform_7(%arg0: i32) -> (i32, i32) {
    %c0_i32 = arith.constant 0 : i32
    %c0_i32_0 = arith.constant 0 : i32
    return %arg0, %c0_i32 : i32, i32
  }
}

</mosaic_0001>

<bundles_post_ra>
// kernel: pointnet_decoder_forward.1
= control target key start
LH: loop header
LB: loop body
LE: loop exit
PB: predicated region body
PF: predicated region fallthrough
CT: control target
= control target key end

     0   :  { %12 = vsyncpa [#allocation3], 0  ;;  %s705_s0 = inlined_call_operand.hbm [shape: f32[2,32], index: 0, kind: input, shape index: {}]   ;;  %s706_s1 = inlined_call_operand.hbm [shape: f32[32,32], index: 1, kind: input, shape index: {}]   ;;  %s707_s2 = inlined_call_operand.vmem [shape: f32[1,32], index: 2, kind: input, shape index: {}]   ;;  %s708_s3 = inlined_call_operand.hbm [shape: f32[32,48], index: 3, kind: input, shape index: {}]   ;;  %s709_s4 = inlined_call_operand.vmem [shape: f32[1,48], index: 4, kind: input, shape index: {}]   ;;  %s710_s5 = inlined_call_operand.hbm [shape: f32[48,48], index: 5, kind: input, shape index: {}]   ;;  %s711_s6 = inlined_call_operand.vmem [shape: f32[1,48], index: 6, kind: input, shape index: {}]   ;;  %s712_s7 = inlined_call_operand.vmem [shape: f32[2,48], index: 7, kind: output, shape index: {}]  }
   0x1   :  { %13 = vsyncpa [#allocation5], 0 }
   0x2   :  { %14 = vsyncpa [#allocation8], 0 }
   0x3   :  { %19 = vsyncadd [#allocation3], 96  ;;  %s573_s24 = smov [#allocation4]   ;;  %s479_s28 = scalar_lea.hbm %s706_s1, 512 }
   0x4   :  { %s32_s25 = sshll.u32 %s573_s24, 4  ;;  %p480_p0 = scmp.ne.s32.totalorder %s706_s1, %s479_s28  ;;  %s33_s25 = int_to_ptr.vmem [resolvable:$true] %s32_s25 }
   0x5   :  { %p483_p1 = scmp.lt.u32.totalorder %s479_s28, %s706_s1 }
   0x7   :  { %p485_p2 = pnand %p483_p1, %p480_p0 }
   0x9   :  { %488 = shalt.err (!%p485_p2)
}
   0xa   :  { %s489_s10 = scalar_lea.vmem %s33_s25, 512  ;;  %p494_p4 = scmp.lt.s32.totalorder %s33_s25, %s33_s25 }
   0xb   :  { %p490_p3 = scmp.ne.s32.totalorder %s33_s25, %s489_s10  ;;  %p495_p5 = scmp.lt.s32.totalorder %s489_s10, %s489_s10 }
   0xd   :  { %p496_p6 = por %p495_p5, %p494_p4 }
   0xf   :  { %p497_p7 = pnand %p496_p6, %p490_p3 }
  0x11   :  { %500 = shalt.err (!%p497_p7)
}
  0x12   :  { %s574_s11 = smov 128   ;;  %s575_s12 = smov 8  }
  0x13   :  { %38 = dma.hbm_to_vmem [thread:$0]  %s706_s1, 512, %s33_s25, [#allocation5], %s574_s11, %s574_s11, %s575_s12  }
  0x14   :  { %s576_s15 = smov [#allocation2]   ;;  %s501_s19 = scalar_lea.hbm %s705_s0, 32 }
  0x15   :  { %s20_s16 = sshll.u32 %s576_s15, 4  ;;  %p502_p8 = scmp.ne.s32.totalorder %s705_s0, %s501_s19  ;;  %s21_s16 = int_to_ptr.vmem [resolvable:$true] %s20_s16 }
  0x16   :  { %p505_p9 = scmp.lt.u32.totalorder %s501_s19, %s705_s0 }
  0x18   :  { %p507_p10 = pnand %p505_p9, %p502_p8 }
  0x1a   :  { %510 = shalt.err (!%p507_p10)
}
  0x1b   :  { %s511_s24 = scalar_lea.vmem %s21_s16, 32  ;;  %s515_s1 = scalar_lea.vmem %s21_s16, 128 }
  0x1c   :  { %p512_p11 = scmp.ne.s32.totalorder %s21_s16, %s511_s24  ;;  %p516_p12 = scmp.lt.s32.totalorder %s21_s16, %s21_s16 }
  0x1d   :  { %p517_p13 = scmp.lt.s32.totalorder %s515_s1, %s511_s24 }
  0x1f   :  { %p518_p0 = por %p517_p13, %p516_p12 }
  0x21   :  { %p519_p1 = pnand %p518_p0, %p512_p11 }
  0x23   :  { %522 = shalt.err (!%p519_p1)
}
  0x24   :  { %s577_s25 = smov 32   ;;  %s578_s26 = smov 2  }
  0x25   :  { %26 = dma.hbm_to_vmem [thread:$0]  %s705_s0, 32, %s21_s16, [#allocation3], %s577_s25, %s577_s25, %s578_s26  }
  0x26   :  { %s579_s29 = smov [#allocation6]   ;;  %s580_s8 = smov [#allocation7]  }
  0x27   :  { %s46_s30 = sshll.u32 %s579_s29, 4  ;;  %s60_s9 = sshll.u32 %s580_s8, 4  ;;  %s47_s30 = int_to_ptr.vmem [resolvable:$true] %s46_s30  ;;  %s651_s9 = int_to_ptr.vmem [resolvable:$true] %s60_s9 }
  0x28   :  { %s523_s14 = scalar_lea.hbm %s708_s3, 512 }
  0x29   :  { %p524_p2 = scmp.ne.s32.totalorder %s708_s3, %s523_s14  ;;  %p527_p3 = scmp.lt.u32.totalorder %s523_s14, %s708_s3 }
  0x2b   :  { %p529_p4 = pnand %p527_p3, %p524_p2 }
  0x2d   :  { %532 = shalt.err (!%p529_p4)
}
  0x2e   :  { %s533_s0 = scalar_lea.vmem %s47_s30, 512  ;;  %p538_p6 = scmp.lt.s32.totalorder %s47_s30, %s47_s30 }
  0x2f   :  { %p534_p5 = scmp.ne.s32.totalorder %s47_s30, %s533_s0  ;;  %p539_p7 = scmp.lt.s32.totalorder %s533_s0, %s533_s0 }
  0x31   :  { %p540_p8 = por %p539_p7, %p538_p6 }
  0x33   :  { %p541_p9 = pnand %p540_p8, %p534_p5 }
  0x35   :  { %544 = shalt.err (!%p541_p9)
}
  0x36   :  { %52 = dma.hbm_to_vmem [thread:$0]  %s708_s3, 512, %s47_s30, [#allocation5], %s574_s11, %s574_s11, %s575_s12  }
  0x37   :  { %s545_s23 = scalar_lea.hbm %s710_s5, 768 }
  0x38   :  { %p546_p10 = scmp.ne.s32.totalorder %s710_s5, %s545_s23  ;;  %p549_p11 = scmp.lt.u32.totalorder %s545_s23, %s710_s5 }
  0x3a   :  { %p551_p12 = pnand %p549_p11, %p546_p10 }
  0x3c   :  { %554 = shalt.err (!%p551_p12)
}
  0x3d   :  { %s555_s27 = scalar_lea.vmem %s651_s9, 768  ;;  %p560_p0 = scmp.lt.s32.totalorder %s651_s9, %s651_s9 }
  0x3e   :  { %p556_p13 = scmp.ne.s32.totalorder %s651_s9, %s555_s27  ;;  %p561_p1 = scmp.lt.s32.totalorder %s555_s27, %s555_s27 }
  0x40   :  { %p562_p2 = por %p561_p1, %p560_p0 }
  0x42   :  { %p563_p3 = pnand %p562_p2, %p556_p13 }
  0x44   :  { %566 = shalt.err (!%p563_p3)
}
  0x45   :  { %66 = dma.hbm_to_vmem [thread:$0]  %s710_s5, 768, %s651_s9, [#allocation8], %s574_s11, %s574_s11, %s575_s12  }
  0x46   :  { %567 = dma.done.wait [#allocation3], 128  }
  0x47   :  { %568 = vsyncadd [#allocation3], 4294967168 }
  0x48   :  { %569 = dma.done.wait [#allocation5], 1024  }
  0x49   :  { %570 = vsyncadd [#allocation5], 4294966272 }
  0x4a   :  { %571 = dma.done.wait [#allocation8], 768  }
  0x4b   :  { %572 = vsyncadd [#allocation8], 4294966528  ;;  %v581_v0 = vmov 0.0|0.0   ;;  %vm582_vm0 = vmmov 0   ;;  %v583_v1 = vmov 0.0   ;;  %v82_v2 = vld [vmem:[#allocation4] sm:$0xff] }
  0x4c   :  { %447 = vmatprep.subr.bf16.mxu1 %v581_v0  ;;  %418 = vmatprep.mubr.msk.f32.mxu1 %vm582_vm0, %v583_v1  ;;  %v83_v3 = vld [vmem:[#allocation4 + $0x8] sm:$0xff]  ;;  %v84_v4 = vld [vmem:[#allocation4 + $0x10] sm:$0xff]  ;;  %v85_v6 = vld [vmem:[#allocation4 + $0x18] sm:$0xff]  ;;  %vm93_vm1 = vcmask 261120   ;;  %vm270_vm4 = vcmask 392192  }
  0x4d   :  { %459 = vmatprep.subr.bf16.mxu0 %v581_v0  ;;  %444 = vmatprep.mubr.msk.f32.mxu0 %vm582_vm0, %v583_v1  ;;  %v448_v5 = vpack.c.bf16 %v83_v3, %v82_v2  ;;  %v451_v7 = vpack.c.bf16 %v85_v6, %v84_v4  ;;  %v170_v8 = vld [vmem:[#allocation6] sm:$0xff]  ;;  %v171_v9 = vld [vmem:[#allocation6 + $0x8] sm:$0xff]  ;;  %v81_v10 = vld [vmem:[#allocation2] sm:$0xff] }
  0x4e   :  { %v454_v11 = vpack.c.bf16 %v171_v9, %v170_v8  ;;  %v172_v12 = vld [vmem:[#allocation6 + $0x10] sm:$0xff]  ;;  %v173_v13 = vld [vmem:[#allocation6 + $0x18] sm:$0xff]  ;;  %v257_v15 = vld [vmem:[#allocation7] sm:$0xff] }
  0x4f   :  { %449 = vmatpush3.bf16.msra.mxu1 %v448_v5  ;;  %v457_v14 = vpack.c.bf16 %v173_v13, %v172_v12  ;;  %v258_v16 = vld [vmem:[#allocation7 + $0x8] sm:$0xff]  ;;  %v259_v17 = vld [vmem:[#allocation7 + $0x10] sm:$0xff]  ;;  %v260_v19 = vld [vmem:[#allocation7 + $0x18] sm:$0xff] }
  0x50   :  { %450 = vmatprep.subr.bf16.mxu1 %v581_v0  ;;  %v460_v18 = vpack.c.bf16 %v258_v16, %v257_v15  ;;  %v463_v20 = vpack.c.bf16 %v260_v19, %v259_v17  ;;  %v387_v21 = vld [vmem:[%s707_s2] ss:$0 sm:$0xff]  ;;  %v261_v27 = vld [vmem:[#allocation7 + $0x20] sm:$0xff]  ;;  %v262_v28 = vld [vmem:[#allocation7 + $0x28] sm:$0xff] }
  0x51   :  { %v466_v29 = vpack.c.bf16 %v262_v28, %v261_v27  ;;  %v389_v30 = vld [vmem:[%s709_s4] ss:$0 sm:$0xff] }
  0x52   :  { %461 = vmatpush3.bf16.msra.mxu0 %v460_v18  ;;  %v391_v36 = vld [vmem:[%s711_s6] ss:$0 sm:$0xff] }
  0x53   :  { %452 = vmatpush3.bf16.msra.mxu1 %v451_v7  ;;  %462 = vmatprep.subr.bf16.mxu0 %v581_v0 }
  0x54   :  { %453 = vmatprep.subr.bf16.mxu1 %v581_v0 }
  0x56   :  { %419 = vmatmul.mubr.msk.f32.vlgmr.msra.gmra.mrb[0].mxu1 %vm93_vm1, %v81_v10  ;;  %464 = vmatpush3.bf16.msra.mxu0 %v463_v20 }
  0x57   :  { %455 = vmatpush3.bf16.msra.mxu1 %v454_v11  ;;  %429 = vmatprep.mubr.msk.f32.mxu1 %vm582_vm0, %v583_v1 }
  0x58   :  { %456 = vmatprep.subr.bf16.mxu1 %v581_v0  ;;  %465 = vmatprep.subr.bf16.mxu0 %v581_v0 }
  0x5a   :  { %467 = vmatpush3.bf16.msra.mxu0 %v466_v29 }
  0x5b   :  { %458 = vmatpush3.bf16.msra.mxu1 %v457_v14 }
 0x129   :  { %v163_v22 = vpop.f32.mrb[0].mxu1 }
 0x12a   :  { %v164_v23 = vadd.f32 %v387_v21, %v163_v22  ;;  %v420_v24 = vpop.f32.mrb[1].mxu1 }
 0x12c   :  { %vm167_vm2 = vcmp.gt.f32.partialorder %v164_v23, 0.0  ;;  %v168_v25 = vmul.f32 0.01, %v164_v23 }
 0x12e   :  { %v169_v26 = vsel %vm167_vm2, %v164_v23, %v168_v25 }
 0x12f   :  { %430 = vmatmul.mubr.msk.f32.vlgmr.msra.gmra.mrb[2].mxu1 %vm93_vm1, %v169_v26 }
 0x202   :  { %v250_v31 = vpop.f32.mrb[2].mxu1 }
 0x203   :  { %v251_v32 = vadd.f32 %v389_v30, %v250_v31  ;;  %v431_v33 = vpop.f32.mrb[3].mxu1 }
 0x205   :  { %vm254_vm3 = vcmp.gt.f32.partialorder %v251_v32, 0.0  ;;  %v255_v34 = vmul.f32 0.01, %v251_v32 }
 0x207   :  { %v256_v35 = vsel %vm254_vm3, %v251_v32, %v255_v34 }
 0x208   :  { %445 = vmatmul.mubr.msk.f32.vlgmr.msra.gmra.mrb[0].mxu0 %vm270_vm4, %v256_v35 }
 0x2db   :  { %v340_v37 = vpop.f32.mrb[0].mxu0 }
 0x2dc   :  { %v341_v38 = vadd.f32 %v391_v36, %v340_v37  ;;  %v446_v39 = vpop.f32.mrb[1].mxu0 }
 0x2de   :  { %344 = vst.msk [vmem:[#allocation9] sm:$0xff] %vm270_vm4, %v341_v38 }
 0x2e5   :  { %v362_v40 = vld [vmem:[#allocation9] sm:$0x3] }
 0x2e6   :  { %363 = vst [vmem:[%s712_s7] sm:$0x3] %v362_v40 }
 0x2e7   :  { %380 = vsyncpa [#allocation3], 1 }
 0x2e8   :  { %381 = vsyncpa [#allocation5], 1 }
 0x2e9   :  { %382 = vsyncpa [#allocation8], 1 }

</bundles_post_ra>
